<compile_context>
chip_gen: v5e
topology: v5e:2x2
jax: 0.10.0
libtpu: 0.0.40
codegen_flags: <defaults>
</compile_context>

<pallas_src>
import functools

import jax
import jax.numpy as jnp
from jax import lax
from jax.experimental import pallas as pl
from jax.experimental.pallas import tpu as pltpu

_F32_MAX = 3.4028235e38
_OUT_LANES = 128


def _nan_to_num(x):
    # torch.nan_to_num(x, nan=0.0, posinf=1.0); neginf defaults to -finfo.max.
    x = jnp.where(jnp.isnan(x), 0.0, x)
    x = jnp.where(x == jnp.inf, 1.0, x)
    x = jnp.maximum(x, -_F32_MAX)          # handles -inf in a single VALU op
    return x


def _loss_kernel(num_aux, *refs):
    """Fused partial sums for one (batch, row-tile) grid step."""
    (cat_ref, lab_ref, regp_ref, regt_ref, adj_ref, line_ref,
     meta_ref, cm_ref) = refs[:8]
    if num_aux > 0:
        connt_ref = refs[8]
        conn_refs = refs[9:9 + num_aux]
        out_ref = refs[9 + num_aux]
    else:
        connt_ref = None
        conn_refs = ()
        out_ref = refs[8]

    meta = meta_ref[0]                                             # (tn, 2) f32
    rowmask = meta[:, 0:1]                                         # adj/conn rows
    nodevalid = meta[:, 1:2]                                       # real (unpadded) rows

    # ----- loss_cat_nodes: cross-entropy partial sums -----
    logits = _nan_to_num(cat_ref[0].astype(jnp.float32))           # (tn, C)
    m = jnp.max(logits, axis=-1, keepdims=True)
    lse = m + jnp.log(jnp.sum(jnp.exp(logits - m), axis=-1, keepdims=True))
    labels = lab_ref[0]                                            # (tn, 1) i32
    cls = lax.broadcasted_iota(jnp.int32, logits.shape, 1)
    tgt = jnp.sum(jnp.where(cls == labels, logits, 0.0),
                  axis=-1, keepdims=True)                          # (tn, 1)
    ce_sum = jnp.sum((lse - tgt) * nodevalid)
    lab_sum = jnp.sum(labels.astype(jnp.float32) * nodevalid)

    # ----- loss_reg_nodes: sum((sigmoid(x) - y)^2) partial sums -----
    regp = _nan_to_num(jax.nn.sigmoid(regp_ref[0].astype(jnp.float32)))
    regt = regt_ref[0].astype(jnp.float32)
    sq_sum = jnp.sum(((regp - regt) ** 2) * nodevalid)

    # ----- expand-mask tile from precomputed row/col factors -----
    em = rowmask * cm_ref[0]                                       # (tn,1)*(1,N)->(tn,N)

    # ----- loss_adj: masked BCE-with-logits partial sums -----
    x = _nan_to_num(adj_ref[0].astype(jnp.float32))
    y = line_ref[0].astype(jnp.float32)
    bce = jnp.maximum(x, 0.0) - x * y + jnp.log1p(jnp.exp(-jnp.abs(x)))
    adj_sum = jnp.sum(bce * em)

    partials = [ce_sum, lab_sum, sq_sum, adj_sum]

    # ----- loss_conn (all aux heads, fused): masked BCE on probabilities ----
    # Stored partial is  sum(em*t*log(p) + em*(1-t)*log(1-p))  (sign folded
    # into the wrapper); em*t and em*(1-t) are hoisted once per tile.
    if num_aux > 0:
        t = connt_ref[0].astype(jnp.float32)                       # (tn, N)
        emt = em * t
        em1mt = em - emt
        for cref in conn_refs:
            p = _nan_to_num(cref[0].astype(jnp.float32))           # (tn, N)
            logp = jnp.maximum(jnp.log(p), -100.0)
            log1mp = jnp.maximum(jnp.log(1.0 - p), -100.0)
            partials.append(jnp.sum(emt * logp + em1mt * log1mp))

    # Pack the K scalars into the lane-dense (1, 1, 1, 128) output block
    # (fully written every step -> no accumulator, both grid axes 'parallel').
    idx = lax.broadcasted_iota(jnp.int32, out_ref.shape, 3)
    vec = jnp.zeros(out_ref.shape, jnp.float32)
    for i, s in enumerate(partials):
        vec = jnp.where(idx == i, s, vec)
    out_ref[...] = vec


def _lane128(lanes):
    """Lane dimension as it is padded in VMEM (multiple of 128)."""
    return ((int(lanes) + 127) // 128) * 128


def _vmem_budgets():
    """(per-tile budget, vmem_limit_bytes), derived per TPU generation."""
    cap = None
    try:
        cap = getattr(pltpu.get_tpu_info(), "vmem_capacity_bytes", None)
    except Exception:
        cap = None
    if cap is not None and cap >= 100 * 1024 * 1024:   # v5e / v6e: 128 MiB
        return 48 * 1024 * 1024, 96 * 1024 * 1024
    # v7x (64 MiB physical per TC) or unknown: stay conservative.
    return 22 * 1024 * 1024, 56 * 1024 * 1024


def _pick_row_tile(n_pad, per_row_bytes, budget):
    """Largest row tile (multiple of 8, divides n_pad) that fits the budget."""
    headroom = 1 * 1024 * 1024            # colmask block, compiler temporaries
    tile = 8
    for t in (8, 16, 32, 64, 128, 256, 512, 1024, 2048):
        if t <= n_pad and n_pad % t == 0 and \
                2 * t * per_row_bytes + headroom <= budget:
            tile = t
    return tile


class SetCriterion:
    """JAX/Pallas port of the set-prediction losses over `graph` outputs."""

    def __init__(self, num_classes, eos_coef, losses):
        self.num_classes = num_classes
        self.eos_coef = float(eos_coef)
        self.losses = losses
        # deterministic init of the registered buffer (unused in forward)
        self.empty_weight = jnp.ones((2,), jnp.float32).at[0].set(5.0)

    def forward(self, outputs, targets):
        # Keep the big streams at their native dtype; casts happen in-kernel.
        pred_cat = outputs['pred_cat_nodes']
        pred_reg = outputs['pred_reg_nodes']
        pred_adj = outputs['pred_adj']
        cat_labels = targets['cat_nodes'].astype(jnp.int32)
        reg_tgt = targets['reg_nodes']
        line = targets['line']
        mask = targets['mask']

        B, N, C = pred_cat.shape
        R = pred_reg.shape[-1]

        aux = outputs.get('aux_outputs', [])
        num_aux = len(aux)
        assert num_aux <= _OUT_LANES - 4
        conn_preds = [a['pred_conn'] for a in aux]
        conn_tgt = targets['conn'] if num_aux > 0 else None
        K = 4 + num_aux

        # ----- pad N to a multiple of 8 so real row tiling is always possible
        Np = ((N + 7) // 8) * 8
        pad = Np - N
        if pad:
            pred_cat = jnp.pad(pred_cat, ((0, 0), (0, pad), (0, 0)))
            pred_reg = jnp.pad(pred_reg, ((0, 0), (0, pad), (0, 0)))
            reg_tgt = jnp.pad(reg_tgt, ((0, 0), (0, pad), (0, 0)))
            cat_labels = jnp.pad(cat_labels, ((0, 0), (0, pad)))
            pred_adj = jnp.pad(pred_adj, ((0, 0), (0, pad), (0, pad)))
            line = jnp.pad(line, ((0, 0), (0, pad), (0, pad)))
            if num_aux > 0:
                conn_preds = [jnp.pad(p, ((0, 0), (0, pad), (0, pad)))
                              for p in conn_preds]
                conn_tgt = jnp.pad(conn_tgt, ((0, 0), (0, pad), (0, pad)))

        # Expand-mask factors, hoisted out of the kernel:
        #   em[b, i, j] = (i < nn_b) * valid[b, j] * (j < nn_b)
        valid = (~mask).astype(jnp.float32)                        # (B, N)
        if pad:
            valid = jnp.pad(valid, ((0, 0), (0, pad)))
        nn = jnp.sum(valid, axis=1, keepdims=True)                 # (B, 1)
        pos = jnp.arange(Np, dtype=jnp.float32)[None, :]           # (1, Np)
        rowmask = (pos < nn).astype(jnp.float32)                   # (B, Np)
        nodevalid = jnp.broadcast_to(
            (pos < float(N)).astype(jnp.float32), (B, Np))         # real rows
        rowmeta = jnp.stack([rowmask, nodevalid], axis=-1)         # (B, Np, 2)
        colmask = (valid * rowmask).reshape(B, 1, Np)
        labels3 = cat_labels.reshape(B, Np, 1)

        # ----- row-tile sizing (lane-padding aware, per-generation budget) --
        budget, vmem_limit = _vmem_budgets()
        streams = [(pred_cat, C), (labels3, 1), (pred_reg, R), (reg_tgt, R),
                   (pred_adj, Np), (line, Np), (rowmeta, 2)]
        if num_aux > 0:
            streams.append((conn_tgt, Np))
            streams.extend((p, Np) for p in conn_preds)
        per_row_bytes = sum(_lane128(l) * arr.dtype.itemsize
                            for arr, l in streams)
        tn = _pick_row_tile(Np, per_row_bytes, budget)
        T = Np // tn

        in_specs = [
            pl.BlockSpec((1, tn, C), lambda b, t: (b, t, 0)),      # cat logits
            pl.BlockSpec((1, tn, 1), lambda b, t: (b, t, 0)),      # labels
            pl.BlockSpec((1, tn, R), lambda b, t: (b, t, 0)),      # reg pred
            pl.BlockSpec((1, tn, R), lambda b, t: (b, t, 0)),      # reg target
            pl.BlockSpec((1, tn, Np), lambda b, t: (b, t, 0)),     # adj logits
            pl.BlockSpec((1, tn, Np), lambda b, t: (b, t, 0)),     # line target
            pl.BlockSpec((1, tn, 2), lambda b, t: (b, t, 0)),      # [rowmask, nodevalid]
            pl.BlockSpec((1, 1, Np), lambda b, t: (b, 0, 0)),      # col mask
        ]
        args = [pred_cat, labels3, pred_reg, reg_tgt, pred_adj, line,
                rowmeta, colmask]

        if num_aux > 0:
            in_specs.append(pl.BlockSpec((1, tn, Np), lambda b, t: (b, t, 0)))
            args.append(conn_tgt)
            for cp in conn_preds:                                  # no jnp.stack
                in_specs.append(
                    pl.BlockSpec((1, tn, Np), lambda b, t: (b, t, 0)))
                args.append(cp)

        partials = pl.pallas_call(
            functools.partial(_loss_kernel, num_aux),
            out_shape=jax.ShapeDtypeStruct((B, T, 1, _OUT_LANES), jnp.float32),
            grid=(B, T),
            in_specs=in_specs,
            out_specs=pl.BlockSpec((1, 1, 1, _OUT_LANES),
                                   lambda b, t: (b, t, 0, 0)),
            compiler_params=pltpu.CompilerParams(
                dimension_semantics=("parallel", "parallel"),
                vmem_limit_bytes=vmem_limit),
        )(*args)

        sums = jnp.sum(partials.reshape(B * T, _OUT_LANES), axis=0)[:K]

        main = {
            'loss_cat_nodes': sums[0] / (B * N),
            'loss_reg_nodes':
                (sums[2] / (B * N * R)) * (sums[1] / (B * N)) * self.eos_coef,
            'loss_adj': sums[3] / (B * N * N),
        }
        losses = {}
        for loss in self.losses:
            if loss == 'loss_conn':
                continue
            losses[loss] = main[loss]
        for i in range(num_aux):
            # sign of the in-kernel partial is folded here (saves VALU ops)
            losses[f'loss_conn_{i}'] = -sums[4 + i] / (B * N * N)
        return losses

    __call__ = forward


# ---------------------------- pure-JAX reference ----------------------------
def _ref_forward(crit, outputs, targets):
    valid = (~targets['mask']).astype(jnp.float32)
    logits = jnp.nan_to_num(outputs['pred_cat_nodes'].astype(jnp.float32),
                            nan=0.0, posinf=1.0)
    labels = targets['cat_nodes']
    logp = jax.nn.log_softmax(logits, axis=-1)
    ce = -jnp.take_along_axis(logp, labels[..., None].astype(jnp.int32),
                              axis=-1)[..., 0]
    loss_cat = jnp.mean(ce)

    reg = jnp.nan_to_num(
        jax.nn.sigmoid(outputs['pred_reg_nodes'].astype(jnp.float32)),
        nan=0.0, posinf=1.0)
    mse = jnp.mean((reg - targets['reg_nodes'].astype(jnp.float32)) ** 2)
    loss_reg = jnp.mean(mse * labels.astype(jnp.float32)) * crit.eos_coef

    B, N = valid.shape
    nn = jnp.sum(valid, axis=1)[:, None, None]
    row = jnp.arange(N, dtype=jnp.float32)[None, :, None]
    col = jnp.arange(N, dtype=jnp.float32)[None, None, :]
    em = valid[:, None, :] * (row < nn) * (col < nn)

    x = jnp.nan_to_num(outputs['pred_adj'].astype(jnp.float32),
                       nan=0.0, posinf=1.0)
    y = targets['line'].astype(jnp.float32)
    bce = jnp.maximum(x, 0.0) - x * y + jnp.log1p(jnp.exp(-jnp.abs(x)))
    loss_adj = jnp.mean(bce * em)

    res = {'loss_cat_nodes': loss_cat,
           'loss_reg_nodes': loss_reg,
           'loss_adj': loss_adj}
    for i, aux in enumerate(outputs.get('aux_outputs', [])):
        p = jnp.nan_to_num(aux['pred_conn'].astype(jnp.float32),
                           nan=0.0, posinf=1.0)
        t = targets['conn'].astype(jnp.float32)
        b = -(t * jnp.maximum(jnp.log(p), -100.0)
              + (1.0 - t) * jnp.maximum(jnp.log(1.0 - p), -100.0))
        res[f'loss_conn_{i}'] = jnp.mean(b * em)
    return res


if __name__ == "__main__":
    key = jax.random.PRNGKey(0)
    B, N, C, R = 2, 8, 2, 4
    ks = jax.random.split(key, 8)

    pred_cat_nodes = jax.random.normal(ks[0], (B, N, C), jnp.float32)
    pred_reg_nodes = jax.random.normal(ks[1], (B, N, R), jnp.float32)
    pred_adj = jax.random.normal(ks[2], (B, N, N), jnp.float32)
    pred_conn = jax.random.uniform(ks[3], (B, N, N), jnp.float32, 0.05, 0.95)

    cat_nodes = jax.random.randint(ks[4], (B, N), 0, C, jnp.int32)
    reg_nodes = jax.random.uniform(ks[5], (B, N, R), jnp.float32)
    line = (jax.random.uniform(ks[6], (B, N, N)) > 0.5).astype(jnp.float32)
    conn = (jax.random.uniform(ks[7], (B, N, N)) > 0.5).astype(jnp.float32)

    num_valid = jnp.array([5, 7], jnp.int32)
    mask = lax.broadcasted_iota(jnp.int32, (B, N), 1) >= num_valid[:, None]

    outputs = {'pred_cat_nodes': pred_cat_nodes,
               'pred_reg_nodes': pred_reg_nodes,
               'pred_adj': pred_adj,
               'aux_outputs': [{'pred_conn': pred_conn}]}
    targets = {'cat_nodes': cat_nodes,
               'reg_nodes': reg_nodes,
               'line': line,
               'conn': conn,
               'mask': mask}

    criterion = SetCriterion(
        num_classes=C, eos_coef=0.1,
        losses=['loss_cat_nodes', 'loss_reg_nodes', 'loss_adj', 'loss_conn'])

    losses = criterion(outputs, targets)
    losses = jax.tree_util.tree_map(jax.block_until_ready, losses)

    # quiet sanity check against a pure-JAX reference
    ref = _ref_forward(criterion, outputs, targets)
    for k in losses:
        assert abs(float(losses[k]) - float(ref[k])) < 1e-4, (k, losses[k], ref[k])

    print("KERNEL_OK")
</pallas_src>

<mosaic_0001>
module attributes {stable_mosaic.version = 11 : i64} {
  func.func @_loss_kernel(%arg0: i32, %arg1: i32, %arg2: memref<1x8x2xf32, #tpu.memory_space<vmem>>, %arg3: memref<1x8x1xi32, #tpu.memory_space<vmem>>, %arg4: memref<1x8x4xf32, #tpu.memory_space<vmem>>, %arg5: memref<1x8x4xf32, #tpu.memory_space<vmem>>, %arg6: memref<1x8x8xf32, #tpu.memory_space<vmem>>, %arg7: memref<1x8x8xf32, #tpu.memory_space<vmem>>, %arg8: memref<1x8x2xf32, #tpu.memory_space<vmem>>, %arg9: memref<1x1x8xf32, #tpu.memory_space<vmem>>, %arg10: memref<1x8x8xf32, #tpu.memory_space<vmem>>, %arg11: memref<1x8x8xf32, #tpu.memory_space<vmem>>, %arg12: memref<1x1x1x128xf32, #tpu.memory_space<vmem>>) attributes {dimension_semantics = [#tpu.dimension_semantics<parallel>, #tpu.dimension_semantics<parallel>], iteration_bounds = array<i64: 2, 1>, scalar_prefetch = 0 : i64, scratch_operands = 0 : i64, tpu.core_type = #tpu.core_type<tc>, window_params = [{transform_indices = @transform_0, window_bounds = array<i64: 1, 8, 2>}, {transform_indices = @transform_1, window_bounds = array<i64: 1, 8, 1>}, {transform_indices = @transform_2, window_bounds = array<i64: 1, 8, 4>}, {transform_indices = @transform_3, window_bounds = array<i64: 1, 8, 4>}, {transform_indices = @transform_4, window_bounds = array<i64: 1, 8, 8>}, {transform_indices = @transform_5, window_bounds = array<i64: 1, 8, 8>}, {transform_indices = @transform_6, window_bounds = array<i64: 1, 8, 2>}, {transform_indices = @transform_7, window_bounds = array<i64: 1, 1, 8>}, {transform_indices = @transform_8, window_bounds = array<i64: 1, 8, 8>}, {transform_indices = @transform_9, window_bounds = array<i64: 1, 8, 8>}, {transform_indices = @transform_10, window_bounds = array<i64: 1, 1, 1, 128>}]} {
    %c0 = arith.constant 0 : index
    %c0_0 = arith.constant 0 : index
    %c0_1 = arith.constant 0 : index
    %0 = vector.load %arg8[%c0, %c0_0, %c0_1] : memref<1x8x2xf32, #tpu.memory_space<vmem>>, vector<1x8x2xf32>
    %1 = vector.shape_cast %0 : vector<1x8x2xf32> to vector<8x2xf32>
    %2 = vector.extract_strided_slice %1 {offsets = [0, 0], sizes = [8, 1], strides = [1, 1]} : vector<8x2xf32> to vector<8x1xf32>
    %3 = vector.extract_strided_slice %1 {offsets = [0, 1], sizes = [8, 1], strides = [1, 1]} : vector<8x2xf32> to vector<8x1xf32>
    %c0_2 = arith.constant 0 : index
    %c0_3 = arith.constant 0 : index
    %c0_4 = arith.constant 0 : index
    %4 = vector.load %arg2[%c0_2, %c0_3, %c0_4] : memref<1x8x2xf32, #tpu.memory_space<vmem>>, vector<1x8x2xf32>
    %5 = vector.shape_cast %4 : vector<1x8x2xf32> to vector<8x2xf32>
    %6 = arith.cmpf one, %5, %5 : vector<8x2xf32>
    %cst = arith.constant 0.000000e+00 : f32
    %7 = vector.broadcast %cst : f32 to vector<8x2xf32>
    %8 = arith.select %6, %7, %5 : vector<8x2xi1>, vector<8x2xf32>
    %cst_5 = arith.constant 0x7F800000 : f32
    %9 = vector.broadcast %cst_5 : f32 to vector<8x2xf32>
    %10 = arith.cmpf oeq, %8, %9 : vector<8x2xf32>
    %cst_6 = arith.constant 1.000000e+00 : f32
    %11 = vector.broadcast %cst_6 : f32 to vector<8x2xf32>
    %12 = arith.select %10, %11, %8 : vector<8x2xi1>, vector<8x2xf32>
    %cst_7 = arith.constant -3.40282347E+38 : f32
    %13 = vector.broadcast %cst_7 : f32 to vector<8x2xf32>
    %14 = arith.maximumf %12, %13 : vector<8x2xf32>
    %cst_8 = arith.constant dense<0xFF800000> : vector<8xf32>
    %15 = vector.multi_reduction <maximumf>, %14, %cst_8 [1] : vector<8x2xf32> to vector<8xf32>
    %16 = vector.shape_cast %15 : vector<8xf32> to vector<8x1xf32>
    %17 = vector.broadcast %16 : vector<8x1xf32> to vector<8x2xf32>
    %18 = arith.subf %14, %17 : vector<8x2xf32>
    %19 = math.exp %18 : vector<8x2xf32>
    %cst_9 = arith.constant dense<0.000000e+00> : vector<8xf32>
    %20 = vector.multi_reduction <add>, %19, %cst_9 [1] : vector<8x2xf32> to vector<8xf32>
    %21 = vector.shape_cast %20 : vector<8xf32> to vector<8x1xf32>
    %22 = math.log %21 : vector<8x1xf32>
    %23 = arith.addf %16, %22 : vector<8x1xf32>
    %c0_10 = arith.constant 0 : index
    %c0_11 = arith.constant 0 : index
    %c0_12 = arith.constant 0 : index
    %24 = vector.load %arg3[%c0_10, %c0_11, %c0_12] : memref<1x8x1xi32, #tpu.memory_space<vmem>>, vector<1x8x1xi32>
    %25 = vector.shape_cast %24 : vector<1x8x1xi32> to vector<8x1xi32>
    %26 = tpu.iota {dimensions = array<i32: 1>} : vector<8x2xi32>
    %27 = vector.broadcast %25 : vector<8x1xi32> to vector<8x2xi32>
    %28 = arith.cmpi eq, %26, %27 : vector<8x2xi32>
    %cst_13 = arith.constant 0.000000e+00 : f32
    %29 = vector.broadcast %cst_13 : f32 to vector<8x2xf32>
    %30 = arith.select %28, %14, %29 : vector<8x2xi1>, vector<8x2xf32>
    %cst_14 = arith.constant dense<0.000000e+00> : vector<8xf32>
    %31 = vector.multi_reduction <add>, %30, %cst_14 [1] : vector<8x2xf32> to vector<8xf32>
    %32 = vector.shape_cast %31 : vector<8xf32> to vector<8x1xf32>
    %33 = arith.subf %23, %32 : vector<8x1xf32>
    %34 = arith.mulf %33, %3 : vector<8x1xf32>
    %35 = vector.shape_cast %34 : vector<8x1xf32> to vector<1x8x1xf32>
    %cst_15 = arith.constant dense<0.000000e+00> : vector<1xf32>
    %36 = vector.multi_reduction <add>, %35, %cst_15 [1, 2] : vector<1x8x1xf32> to vector<1xf32>
    %37 = vector.shape_cast %36 : vector<1xf32> to vector<1x1x1xf32>
    %38 = vector.extract %37[0, 0, 0] : f32 from vector<1x1x1xf32>
    %39 = arith.sitofp %25 : vector<8x1xi32> to vector<8x1xf32>
    %40 = arith.mulf %39, %3 : vector<8x1xf32>
    %41 = vector.shape_cast %40 : vector<8x1xf32> to vector<1x8x1xf32>
    %cst_16 = arith.constant dense<0.000000e+00> : vector<1xf32>
    %42 = vector.multi_reduction <add>, %41, %cst_16 [1, 2] : vector<1x8x1xf32> to vector<1xf32>
    %43 = vector.shape_cast %42 : vector<1xf32> to vector<1x1x1xf32>
    %44 = vector.extract %43[0, 0, 0] : f32 from vector<1x1x1xf32>
    %c0_17 = arith.constant 0 : index
    %c0_18 = arith.constant 0 : index
    %c0_19 = arith.constant 0 : index
    %45 = vector.load %arg4[%c0_17, %c0_18, %c0_19] : memref<1x8x4xf32, #tpu.memory_space<vmem>>, vector<1x8x4xf32>
    %46 = vector.shape_cast %45 : vector<1x8x4xf32> to vector<8x4xf32>
    %47 = arith.negf %46 : vector<8x4xf32>
    %48 = math.exp %47 : vector<8x4xf32>
    %cst_20 = arith.constant 1.000000e+00 : f32
    %49 = vector.broadcast %cst_20 : f32 to vector<8x4xf32>
    %50 = arith.addf %49, %48 : vector<8x4xf32>
    %51 = arith.divf %49, %50 : vector<8x4xf32>
    %52 = arith.cmpf one, %51, %51 : vector<8x4xf32>
    %cst_21 = arith.constant 0.000000e+00 : f32
    %53 = vector.broadcast %cst_21 : f32 to vector<8x4xf32>
    %54 = arith.select %52, %53, %51 : vector<8x4xi1>, vector<8x4xf32>
    %cst_22 = arith.constant 0x7F800000 : f32
    %55 = vector.broadcast %cst_22 : f32 to vector<8x4xf32>
    %56 = arith.cmpf oeq, %54, %55 : vector<8x4xf32>
    %cst_23 = arith.constant 1.000000e+00 : f32
    %57 = vector.broadcast %cst_23 : f32 to vector<8x4xf32>
    %58 = arith.select %56, %57, %54 : vector<8x4xi1>, vector<8x4xf32>
    %cst_24 = arith.constant -3.40282347E+38 : f32
    %59 = vector.broadcast %cst_24 : f32 to vector<8x4xf32>
    %60 = arith.maximumf %58, %59 : vector<8x4xf32>
    %c0_25 = arith.constant 0 : index
    %c0_26 = arith.constant 0 : index
    %c0_27 = arith.constant 0 : index
    %61 = vector.load %arg5[%c0_25, %c0_26, %c0_27] : memref<1x8x4xf32, #tpu.memory_space<vmem>>, vector<1x8x4xf32>
    %62 = vector.shape_cast %61 : vector<1x8x4xf32> to vector<8x4xf32>
    %63 = arith.subf %60, %62 : vector<8x4xf32>
    %64 = arith.mulf %63, %63 : vector<8x4xf32>
    %65 = vector.broadcast %3 : vector<8x1xf32> to vector<8x4xf32>
    %66 = arith.mulf %64, %65 : vector<8x4xf32>
    %67 = vector.shape_cast %66 : vector<8x4xf32> to vector<1x8x4xf32>
    %cst_28 = arith.constant dense<0.000000e+00> : vector<1xf32>
    %68 = vector.multi_reduction <add>, %67, %cst_28 [1, 2] : vector<1x8x4xf32> to vector<1xf32>
    %69 = vector.shape_cast %68 : vector<1xf32> to vector<1x1x1xf32>
    %70 = vector.extract %69[0, 0, 0] : f32 from vector<1x1x1xf32>
    %c0_29 = arith.constant 0 : index
    %c0_30 = arith.constant 0 : index
    %c0_31 = arith.constant 0 : index
    %71 = vector.load %arg9[%c0_29, %c0_30, %c0_31] : memref<1x1x8xf32, #tpu.memory_space<vmem>>, vector<1x1x8xf32>
    %72 = vector.shape_cast %71 : vector<1x1x8xf32> to vector<1x8xf32>
    %73 = vector.broadcast %2 : vector<8x1xf32> to vector<8x8xf32>
    %74 = vector.broadcast %72 : vector<1x8xf32> to vector<8x8xf32>
    %75 = arith.mulf %73, %74 : vector<8x8xf32>
    %c0_32 = arith.constant 0 : index
    %c0_33 = arith.constant 0 : index
    %c0_34 = arith.constant 0 : index
    %76 = vector.load %arg6[%c0_32, %c0_33, %c0_34] : memref<1x8x8xf32, #tpu.memory_space<vmem>>, vector<1x8x8xf32>
    %77 = vector.shape_cast %76 : vector<1x8x8xf32> to vector<8x8xf32>
    %78 = arith.cmpf one, %77, %77 : vector<8x8xf32>
    %cst_35 = arith.constant 0.000000e+00 : f32
    %79 = vector.broadcast %cst_35 : f32 to vector<8x8xf32>
    %80 = arith.select %78, %79, %77 : vector<8x8xi1>, vector<8x8xf32>
    %cst_36 = arith.constant 0x7F800000 : f32
    %81 = vector.broadcast %cst_36 : f32 to vector<8x8xf32>
    %82 = arith.cmpf oeq, %80, %81 : vector<8x8xf32>
    %cst_37 = arith.constant 1.000000e+00 : f32
    %83 = vector.broadcast %cst_37 : f32 to vector<8x8xf32>
    %84 = arith.select %82, %83, %80 : vector<8x8xi1>, vector<8x8xf32>
    %cst_38 = arith.constant -3.40282347E+38 : f32
    %85 = vector.broadcast %cst_38 : f32 to vector<8x8xf32>
    %86 = arith.maximumf %84, %85 : vector<8x8xf32>
    %c0_39 = arith.constant 0 : index
    %c0_40 = arith.constant 0 : index
    %c0_41 = arith.constant 0 : index
    %87 = vector.load %arg7[%c0_39, %c0_40, %c0_41] : memref<1x8x8xf32, #tpu.memory_space<vmem>>, vector<1x8x8xf32>
    %88 = vector.shape_cast %87 : vector<1x8x8xf32> to vector<8x8xf32>
    %cst_42 = arith.constant 0.000000e+00 : f32
    %89 = vector.broadcast %cst_42 : f32 to vector<8x8xf32>
    %90 = arith.maximumf %86, %89 : vector<8x8xf32>
    %91 = arith.mulf %86, %88 : vector<8x8xf32>
    %92 = arith.subf %90, %91 : vector<8x8xf32>
    %93 = math.absf %86 : vector<8x8xf32>
    %cst_43 = arith.constant 0.000000e+00 : f32
    %94 = vector.broadcast %cst_43 : f32 to vector<8x8xf32>
    %95 = arith.subf %94, %93 : vector<8x8xf32>
    %96 = math.exp %95 : vector<8x8xf32>
    %97 = math.log1p %96 : vector<8x8xf32>
    %98 = arith.addf %92, %97 : vector<8x8xf32>
    %99 = arith.mulf %98, %75 : vector<8x8xf32>
    %100 = vector.shape_cast %99 : vector<8x8xf32> to vector<1x8x8xf32>
    %cst_44 = arith.constant dense<0.000000e+00> : vector<1xf32>
    %101 = vector.multi_reduction <add>, %100, %cst_44 [1, 2] : vector<1x8x8xf32> to vector<1xf32>
    %102 = vector.shape_cast %101 : vector<1xf32> to vector<1x1x1xf32>
    %103 = vector.extract %102[0, 0, 0] : f32 from vector<1x1x1xf32>
    %c0_45 = arith.constant 0 : index
    %c0_46 = arith.constant 0 : index
    %c0_47 = arith.constant 0 : index
    %104 = vector.load %arg10[%c0_45, %c0_46, %c0_47] : memref<1x8x8xf32, #tpu.memory_space<vmem>>, vector<1x8x8xf32>
    %105 = vector.shape_cast %104 : vector<1x8x8xf32> to vector<8x8xf32>
    %106 = arith.mulf %75, %105 : vector<8x8xf32>
    %107 = arith.subf %75, %106 : vector<8x8xf32>
    %c0_48 = arith.constant 0 : index
    %c0_49 = arith.constant 0 : index
    %c0_50 = arith.constant 0 : index
    %108 = vector.load %arg11[%c0_48, %c0_49, %c0_50] : memref<1x8x8xf32, #tpu.memory_space<vmem>>, vector<1x8x8xf32>
    %109 = vector.shape_cast %108 : vector<1x8x8xf32> to vector<8x8xf32>
    %110 = arith.cmpf one, %109, %109 : vector<8x8xf32>
    %cst_51 = arith.constant 0.000000e+00 : f32
    %111 = vector.broadcast %cst_51 : f32 to vector<8x8xf32>
    %112 = arith.select %110, %111, %109 : vector<8x8xi1>, vector<8x8xf32>
    %cst_52 = arith.constant 0x7F800000 : f32
    %113 = vector.broadcast %cst_52 : f32 to vector<8x8xf32>
    %114 = arith.cmpf oeq, %112, %113 : vector<8x8xf32>
    %cst_53 = arith.constant 1.000000e+00 : f32
    %115 = vector.broadcast %cst_53 : f32 to vector<8x8xf32>
    %116 = arith.select %114, %115, %112 : vector<8x8xi1>, vector<8x8xf32>
    %cst_54 = arith.constant -3.40282347E+38 : f32
    %117 = vector.broadcast %cst_54 : f32 to vector<8x8xf32>
    %118 = arith.maximumf %116, %117 : vector<8x8xf32>
    %119 = math.log %118 : vector<8x8xf32>
    %cst_55 = arith.constant -1.000000e+02 : f32
    %120 = vector.broadcast %cst_55 : f32 to vector<8x8xf32>
    %121 = arith.maximumf %119, %120 : vector<8x8xf32>
    %cst_56 = arith.constant 1.000000e+00 : f32
    %122 = vector.broadcast %cst_56 : f32 to vector<8x8xf32>
    %123 = arith.subf %122, %118 : vector<8x8xf32>
    %124 = math.log %123 : vector<8x8xf32>
    %cst_57 = arith.constant -1.000000e+02 : f32
    %125 = vector.broadcast %cst_57 : f32 to vector<8x8xf32>
    %126 = arith.maximumf %124, %125 : vector<8x8xf32>
    %127 = arith.mulf %106, %121 : vector<8x8xf32>
    %128 = arith.mulf %107, %126 : vector<8x8xf32>
    %129 = arith.addf %127, %128 : vector<8x8xf32>
    %130 = vector.shape_cast %129 : vector<8x8xf32> to vector<1x8x8xf32>
    %cst_58 = arith.constant dense<0.000000e+00> : vector<1xf32>
    %131 = vector.multi_reduction <add>, %130, %cst_58 [1, 2] : vector<1x8x8xf32> to vector<1xf32>
    %132 = vector.shape_cast %131 : vector<1xf32> to vector<1x1x1xf32>
    %133 = vector.extract %132[0, 0, 0] : f32 from vector<1x1x1xf32>
    %134 = tpu.iota {dimensions = array<i32: 3>} : vector<1x1x1x128xi32>
    %cst_59 = arith.constant 0.000000e+00 : f32
    %135 = vector.broadcast %cst_59 : f32 to vector<1x1x1x128xf32>
    %c0_i32 = arith.constant 0 : i32
    %136 = vector.broadcast %c0_i32 : i32 to vector<1x1x1x128xi32>
    %137 = arith.cmpi eq, %134, %136 : vector<1x1x1x128xi32>
    %138 = vector.broadcast %38 : f32 to vector<1x1x1x128xf32>
    %139 = arith.select %137, %138, %135 : vector<1x1x1x128xi1>, vector<1x1x1x128xf32>
    %c1_i32 = arith.constant 1 : i32
    %140 = vector.broadcast %c1_i32 : i32 to vector<1x1x1x128xi32>
    %141 = arith.cmpi eq, %134, %140 : vector<1x1x1x128xi32>
    %142 = vector.broadcast %44 : f32 to vector<1x1x1x128xf32>
    %143 = arith.select %141, %142, %139 : vector<1x1x1x128xi1>, vector<1x1x1x128xf32>
    %c2_i32 = arith.constant 2 : i32
    %144 = vector.broadcast %c2_i32 : i32 to vector<1x1x1x128xi32>
    %145 = arith.cmpi eq, %134, %144 : vector<1x1x1x128xi32>
    %146 = vector.broadcast %70 : f32 to vector<1x1x1x128xf32>
    %147 = arith.select %145, %146, %143 : vector<1x1x1x128xi1>, vector<1x1x1x128xf32>
    %c3_i32 = arith.constant 3 : i32
    %148 = vector.broadcast %c3_i32 : i32 to vector<1x1x1x128xi32>
    %149 = arith.cmpi eq, %134, %148 : vector<1x1x1x128xi32>
    %150 = vector.broadcast %103 : f32 to vector<1x1x1x128xf32>
    %151 = arith.select %149, %150, %147 : vector<1x1x1x128xi1>, vector<1x1x1x128xf32>
    %c4_i32 = arith.constant 4 : i32
    %152 = vector.broadcast %c4_i32 : i32 to vector<1x1x1x128xi32>
    %153 = arith.cmpi eq, %134, %152 : vector<1x1x1x128xi32>
    %154 = vector.broadcast %133 : f32 to vector<1x1x1x128xf32>
    %155 = arith.select %153, %154, %151 : vector<1x1x1x128xi1>, vector<1x1x1x128xf32>
    %c0_60 = arith.constant 0 : index
    %c0_61 = arith.constant 0 : index
    %c0_62 = arith.constant 0 : index
    %c0_63 = arith.constant 0 : index
    %156 = vector.load %arg12[%c0_60, %c0_61, %c0_62, %c0_63] : memref<1x1x1x128xf32, #tpu.memory_space<vmem>>, vector<1x1x1x128xf32>
    tpu.vector_store %arg12[%c0_60, %c0_61, %c0_62, %c0_63], %155 {strides = array<i32>} : memref<1x1x1x128xf32, #tpu.memory_space<vmem>>, vector<1x1x1x128xf32>,
    return
  }
  func.func @transform_0(%arg0: i32, %arg1: i32) -> (i32, i32, i32) {
    %c0_i32 = arith.constant 0 : i32
    %c0_i32_0 = arith.constant 0 : i32
    return %arg0, %arg1, %c0_i32 : i32, i32, i32
  }
  func.func @transform_1(%arg0: i32, %arg1: i32) -> (i32, i32, i32) {
    %c0_i32 = arith.constant 0 : i32
    %c0_i32_0 = arith.constant 0 : i32
    return %arg0, %arg1, %c0_i32 : i32, i32, i32
  }
  func.func @transform_2(%arg0: i32, %arg1: i32) -> (i32, i32, i32) {
    %c0_i32 = arith.constant 0 : i32
    %c0_i32_0 = arith.constant 0 : i32
    return %arg0, %arg1, %c0_i32 : i32, i32, i32
  }
  func.func @transform_3(%arg0: i32, %arg1: i32) -> (i32, i32, i32) {
    %c0_i32 = arith.constant 0 : i32
    %c0_i32_0 = arith.constant 0 : i32
    return %arg0, %arg1, %c0_i32 : i32, i32, i32
  }
  func.func @transform_4(%arg0: i32, %arg1: i32) -> (i32, i32, i32) {
    %c0_i32 = arith.constant 0 : i32
    %c0_i32_0 = arith.constant 0 : i32
    return %arg0, %arg1, %c0_i32 : i32, i32, i32
  }
  func.func @transform_5(%arg0: i32, %arg1: i32) -> (i32, i32, i32) {
    %c0_i32 = arith.constant 0 : i32
    %c0_i32_0 = arith.constant 0 : i32
    return %arg0, %arg1, %c0_i32 : i32, i32, i32
  }
  func.func @transform_6(%arg0: i32, %arg1: i32) -> (i32, i32, i32) {
    %c0_i32 = arith.constant 0 : i32
    %c0_i32_0 = arith.constant 0 : i32
    return %arg0, %arg1, %c0_i32 : i32, i32, i32
  }
  func.func @transform_7(%arg0: i32, %arg1: i32) -> (i32, i32, i32) {
    %c0_i32 = arith.constant 0 : i32
    %c0_i32_0 = arith.constant 0 : i32
    %c0_i32_1 = arith.constant 0 : i32
    return %arg0, %c0_i32, %c0_i32_0 : i32, i32, i32
  }
  func.func @transform_8(%arg0: i32, %arg1: i32) -> (i32, i32, i32) {
    %c0_i32 = arith.constant 0 : i32
    %c0_i32_0 = arith.constant 0 : i32
    return %arg0, %arg1, %c0_i32 : i32, i32, i32
  }
  func.func @transform_9(%arg0: i32, %arg1: i32) -> (i32, i32, i32) {
    %c0_i32 = arith.constant 0 : i32
    %c0_i32_0 = arith.constant 0 : i32
    return %arg0, %arg1, %c0_i32 : i32, i32, i32
  }
  func.func @transform_10(%arg0: i32, %arg1: i32) -> (i32, i32, i32, i32) {
    %c0_i32 = arith.constant 0 : i32
    %c0_i32_0 = arith.constant 0 : i32
    %c0_i32_1 = arith.constant 0 : i32
    return %arg0, %arg1, %c0_i32, %c0_i32_0 : i32, i32, i32, i32
  }
}

</mosaic_0001>

<bundles_post_ra>
// kernel: tpu_custom_call.1
= control target key start
LH: loop header
LB: loop body
LE: loop exit
PB: predicated region body
PF: predicated region fallthrough
CT: control target
= control target key end

     0   :  { %s1436_s0 = inlined_call_operand.vmem [shape: f32[2,8,2], index: 0, kind: input, shape index: {}]   ;;  %s1437_s1 = inlined_call_operand.vmem [shape: s32[2,8,1], index: 1, kind: input, shape index: {}]   ;;  %s1438_s2 = inlined_call_operand.vmem [shape: f32[2,8,4], index: 2, kind: input, shape index: {}]   ;;  %s1439_s3 = inlined_call_operand.vmem [shape: f32[2,8,4], index: 3, kind: input, shape index: {}]   ;;  %s1440_s4 = inlined_call_operand.vmem [shape: f32[2,8,8], index: 4, kind: input, shape index: {}]   ;;  %s1441_s5 = inlined_call_operand.vmem [shape: f32[2,8,8], index: 5, kind: input, shape index: {}]   ;;  %s1442_s6 = inlined_call_operand.vmem [shape: f32[2,8,2], index: 6, kind: input, shape index: {}]   ;;  %s1443_s7 = inlined_call_operand.vmem [shape: f32[2,1,8], index: 7, kind: input, shape index: {}]   ;;  %s1444_s8 = inlined_call_operand.vmem [shape: f32[2,8,8], index: 8, kind: input, shape index: {}]   ;;  %s1445_s9 = inlined_call_operand.vmem [shape: f32[2,8,8], index: 9, kind: input, shape index: {}]   ;;  %s1446_s10 = inlined_call_operand.hbm [shape: f32[2,1,1,128], index: 10, kind: output, shape index: {}]  }
   0x1   :  { %1447 = sst [smem:[#allocation5_spill]] %s1436_s0 }
   0x2   :  { %1448 = sst [smem:[#allocation6_spill]] %s1437_s1 }
   0x3   :  { %15 = vsyncpa [#allocation3], 0 }
   0x4   :  { %17 = vsyncpa [#allocation3 + $0x1], 0  ;;  %s1268_s13 = smov 0   ;;  %s1270_s14 = smov 0  }
   0x5   :  { %s1272_s15 = smov 0   ;;  %s1274_s16 = smov 0  }
   0x6   :  { %s1276_s17 = smov 0   ;;  %s1278_s18 = smov 0  }
   0x7 LB: > { %s1025_s19 = sadd.s32 4294967295, %s1208_s18   ;;  %s1026_s20 = sadd.s32 4294967294, %s1208_s18   ;;  %s1208_s18 = sphi %s1278_s18, %s23_s18   ;;  %s1204_s17 = sphi %s1276_s17, %s1457_s17   ;;  %s1200_s16 = sphi %s1274_s16, %s1456_s16   ;;  %s1196_s15 = sphi %s1272_s15, %s1455_s15   ;;  %s1192_s14 = sphi %s1270_s14, %s1454_s14   ;;  %s1188_s13 = sphi %s1268_s13, %s1453_s13  }
   0x8   : > { %s35_s21 = sadd.s32 1, %s1204_s17  ;;  %s322_s22 = sadd.s32 1, %s1196_s15 }
   0x9   : > { %p37_p0 = scmp.ge.s32.totalorder %s35_s21, 2  ;;  %p332_p1 = scmp.ne.s32.totalorder %s1196_s15, %s1192_s14 }
   0xa   : > { %p333_p2 = scmp.eq.s32.totalorder %s1025_s19, 1  ;;  %p338_p3 = scmp.ne.s32.totalorder %s1192_s14, %s1188_s13 }
   0xb   : > { %s1459_s21 = smov (%p37_p0, %s35_s21), 0  ;;  %p339_p5 = scmp.eq.s32.totalorder %s1026_s20, 1 }
   0xc   : > { %p1308_p4 = por %p333_p2, %p332_p1  ;;  %s317_s24 = ssub.s32 %s1204_s17, %s1459_s21 }
   0xd   : > { %p1029_p6 = scmp.ge.s32.totalorder %s1208_s18, 1  ;;  %p320_p7 = scmp.eq.s32.totalorder %s317_s24, 0 }
   0xe   : > { %p1315_p8 = por %p339_p5, %p338_p3  ;;  %p453_p9 = scmp.lt.s32.totalorder %s1208_s18, 3 }
   0xf   : > { %s1321_s26 = scalar_select %p320_p7, %s1196_s15, %s322_s22  }
  0x10   : > { %p454_p10 = pnand %p1029_p6, %p453_p9 }
  0x11   : > { %p551_p11 = scmp.lt.s32.totalorder (!%p454_p10), %s1200_s16, 1  ;;  %s1451_s0 = sld [smem:[#allocation5_spill]] (!%p454_p10) }
  0x12   : > { %457 = sbr.rel (%p454_p10) target bundleno = 602 (0x25a), region = 60  ;;  %s1452_s1 = sld [smem:[#allocation6_spill]] (!%p454_p10) }
  0x13   : > { %s1211_s19 = smov (!%p454_p10), 127  }
  0x17   : > { %v1210_v0 = vmov 0   ;;  %s1325_s27 = scalar_select %p551_p11, %s1200_s16, 1  ;;  %vm624_vm2 = vcmask 15360   ;;  %v638_v12 = vlaneseq  ;;  %v1212_v18 = vmov 1  }
  0x18   : > { %1110 = vset.pattern.permute.xlu0 %v1210_v0  ;;  %1111 = vset.pattern.permute.xlu2 %v1210_v0  ;;  %vm759_vm9 = vcmask 64512   ;;  %vm654_vm10 = vcmask 7168  }
  0x19   : > { %s1328_s28 = sshll.u32 %s1325_s27, 3  ;;  %v1343_v13 = vand.u32 127, %v638_v12  ;;  %s602_s29 = scalar_lea.vmem %s1443_s7, %s1325_s27 }
  0x1a   : > { %s557_s11 = scalar_lea.vmem %s1451_s0, %s1328_s28  ;;  %s564_s20 = scalar_lea.vmem %s1452_s1, %s1328_s28  ;;  %v1113_v45 = vld [vmem:[%s602_s29] ss:$0 sm:$0xff] }
  0x1b   : > { %v618_v1 = vld [vmem:[%s557_s11] sm:$0xff]  ;;  %s599_s12 = scalar_lea.vmem %s1442_s6, %s1328_s28  ;;  %s585_s24 = scalar_lea.vmem %s1440_s4, %s1328_s28 }
  0x1c   : > { %vm619_vm0 = vcmp.ne.f32.partialorder %v618_v1, %v618_v1  ;;  %v1339_v6 = vld [vmem:[%s564_s20] sm:$0xff]  ;;  %s592_s22 = scalar_lea.vmem %s1441_s5, %s1328_s28  ;;  %s578_s11 = scalar_lea.vmem %s1439_s3, %s1328_s28 }
  0x1d   : > { %v620_v2 = vsel %vm619_vm0, 0.0, %v618_v1  ;;  %v617_v17 = vld [vmem:[%s599_s12] sm:$0xff]  ;;  %s571_s12 = scalar_lea.vmem %s1438_s2, %s1328_s28  ;;  %v665_v55 = vcvt.s32.f32 %v1339_v6  ;;  %s616_s20 = scalar_lea.vmem %s1445_s9, %s1328_s28  ;;  %vm714_vm0 = vcmask 31744  }
  0x1e   : > { %vm621_vm1 = vcmp.eq.f32.partialorder %v620_v2, inf  ;;  %727 = vperm.xlu2 %1111, %v617_v17   ;;  %v734_v26 = vld [vmem:[%s585_s24] sm:$0xff]  ;;  %s609_s30 = scalar_lea.vmem %s1444_s8, %s1328_s28  ;;  %s549_s27 = sand.u32 1, %s1192_s14  }
  0x1f   : > { %v622_v3 = vsel %vm621_vm1, 1.0, %v620_v2  ;;  %vm735_vm4 = vcmp.ne.f32.partialorder %v734_v26, %v734_v26  ;;  %v681_v33 = vld [vmem:[%s571_s12] sm:$0xff]  ;;  %s550_s24 = scalar_lea.vmem [#allocation2], %s549_s27  ;;  %s1150_s0 = scalar_lea.hbm %s1446_s10, 2 }
  0x20   : > { %v623_v4 = vmax.f32 %v622_v3, -3.4028235e+38  ;;  %v736_v27 = vsel %vm735_vm4, 0.0, %v734_v26  ;;  %v1039_v34 = vmul.f32 -1.442695, %v681_v33  ;;  %v740_v39 = vld [vmem:[%s592_s22] sm:$0xff] }
  0x21   : > { %vm737_vm5 = vcmp.eq.f32.partialorder %v736_v27, inf  ;;  %v773_v12 = vld [vmem:[%s616_s20] sm:$0xff]  ;;  %vm805_vm4 = vcmp.eq.s32.totalorder %v1343_v13, 2  ;;  %s825_s20 = scalar_lea.hbm %s1446_s10, %s1200_s16  ;;  %s816_s16 = scalar_lea.sflag [#allocation3], %s549_s27 }
  0x22   : > { %v625_v5 = vsel %vm624_vm2, %v623_v4, -inf  ;;  %v738_v28 = vsel %vm737_vm5, 1.0, %v736_v27  ;;  %vm774_vm15 = vcmp.ne.f32.partialorder %v773_v12, %v773_v12  ;;  %vm808_vm5 = vcmp.eq.s32.totalorder %v1343_v13, 3 }
  0x23   : > { %626 = vmax.xlane.f32.xlu0 %v625_v5  ;;  %v739_v29 = vmax.f32 %v738_v28, -3.4028235e+38 }
  0x25   : > { %v744_v30 = vand.u32 2147483647, %v739_v29  ;;  %v741_v42 = vmax.f32 %v739_v29, 0.0  ;;  %v742_v43 = vmul.f32 %v740_v39, %v739_v29 }
  0x26   : > { %667 = vrot.lane.b32.xlu2 %v617_v17, %s1211_s19 }
  0x27   : > { %1112 = vset.pattern.permute.xlu2 %v1212_v18  ;;  %v745_v31 = vsub.f32 0.0, %v744_v30  ;;  %v743_v49 = vsub.f32 %v741_v42, %v742_v43 }
  0x29   : > { %v746_v32 = vmul.f32 1.442695, %v745_v31 }
  0x2e   : > { %710 = vperm.xlu2 %1112, %v617_v17  }
  0x37   : > { %641 = vperm.xlu0 %1110, %v1339_v6  }
  0x78   : > { %v728_v46 = vpop.permute.xlu2 %727 }
  0x79   : > { %v1372_v52 = vmul.f32 %v1113_v45, %v728_v46 }
  0x80   : > { %v668_v62 = vpop.permute.xlu2 %667 }
  0x81   : > { %v670_v1 = vmul.f32 %v668_v62, %v665_v55 }
  0x83   : > { %v671_v3 = vsel %vm654_vm10, %v670_v1, 0.0 }
  0x96   : > { %v627_v7 = vpop.xlane.xlu0 %626 }
  0x97   : > { %v628_v8 = vsub.f32 %v623_v4, %v627_v7 }
  0x99   : > { %v629_v9 = vmul.f32 1.442695, %v628_v8 }
  0x9b   : > { %1114 = vpow2.f32 %v629_v9  ;;  %v706_v9 = vld [vmem:[%s578_s11] sm:$0xff] }
  0xa1   : > { %v1115_v10 = vpop.eup %1114 }
  0xa2   : > { %v631_v11 = vsel %vm624_vm2, %v1115_v10, 0.0 }
  0xa3   : > { %632 = vadd.xlane.f32.xlu1 %v631_v11 }
  0xa9   : > { %v642_v14 = vpop.permute.xlu0 %641 }
  0xaa   : > { %vm643_vm3 = vcmp.eq.s32.totalorder %v1343_v13, %v642_v14  ;;  %v711_v14 = vpop.permute.xlu2 %710 }
  0xab   : > { %v644_v15 = vsel %vm643_vm3, %v623_v4, 0.0  ;;  %vm802_vm3 = vcmp.eq.s32.totalorder %v1343_v13, 1 }
  0xac   : > { %v645_v16 = vsel %vm624_vm2, %v644_v15, 0.0  ;;  %vm799_vm2 = vcmp.eq.s32.totalorder %v1343_v13, 0 }
  0xad   : > { %646 = vadd.xlane.f32.xlu1 %v645_v16  ;;  %v775_v16 = vsel %vm774_vm15, 0.0, %v773_v12 }
  0xae   : > { %vm776_vm1 = vcmp.eq.f32.partialorder %v775_v16, inf }
  0xaf   : > { %v777_v18 = vsel %vm776_vm1, 1.0, %v775_v16 }
 0x116   : > { %v633_v19 = vpop.xlane.xlu1 %632 }
 0x117   : > { %1116 = vlog2.f32 %v633_v19  ;;  %v778_v19 = vmax.f32 %v777_v18, -3.4028235e+38 }
 0x118   : > { %1118 = vpow2.f32 %v746_v32 }
 0x119   : > { %1120 = vpow2.f32 %v1039_v34 }
 0x11d   : > { %v1117_v20 = vpop.eup %1116 }
 0x11e   : > { %v635_v21 = vmul.f32 0.6931472, %v1117_v20  ;;  %v1119_v35 = vpop.eup %1118  ;;  %v782_v20 = vsub.f32 1.0, %v778_v19 }
 0x11f   : > { %v1121_v36 = vpop.eup %1120  ;;  %v748_v37 = vadd.f32 1.0, %v1119_v35  ;;  %v751_v38 = vmul.f32 -0.5, %v1119_v35  ;;  %v754_v44 = vand.u32 2147483647, %v1119_v35 }
 0x120   : > { %v636_v22 = vadd.f32 %v635_v21, %v627_v7  ;;  %v647_v23 = vpop.xlane.xlu1 %646  ;;  %v685_v40 = vadd.f32 1.0, %v1121_v36 }
 0x121   : > { %1122 = vlog2.f32 %v748_v37  ;;  %v752_v41 = vadd.f32 1.0, %v751_v38  ;;  %vm755_vm6 = vcmp.lt.f32.partialorder %v754_v44, 0.0004427343 }
 0x122   : > { %v648_v24 = vsub.f32 %v636_v22, %v647_v23  ;;  %1124 = vrcp.f32 %v685_v40  ;;  %vm691_vm7 = vweird.f32 %v685_v40  ;;  %v697_v56 = vand.u32 2147483648, %v685_v40  ;;  %v770_v23 = vld [vmem:[%s609_s30] sm:$0xff]  ;;  %s827_s30 = sshll.u32 %s550_s24, 4  ;;  %s828_s30 = int_to_ptr.vmem [resolvable:$true] %s827_s30 }
 0x123   : > { %v753_v47 = vmul.f32 %v1119_v35, %v752_v41  ;;  %v695_v59 = vand.u32 2147483647, %v685_v40  ;;  %1126 = vlog2.f32 %v778_v19 }
 0x124   : > { %v649_v25 = vmul.f32 %v648_v24, %v617_v17  ;;  %v698_v63 = vor.u32 1.1754944e-38, %v697_v56  ;;  %1128 = vlog2.f32 %v782_v20  ;;  %v771_v24 = vmul.f32 %v770_v23, %v1372_v52 }
 0x125   : > { %vm696_vm12 = vcmp.eq.f32.partialorder %v695_v59, 8.507059e+37 }
 0x126   : > { %651 = vrot.lane.b32.xlu1 %v649_v25, %s1211_s19  ;;  %v772_v27 = vsub.f32 %v1372_v52, %v771_v24 }
 0x127   : > { %v1123_v48 = vpop.eup %1122 }
 0x128   : > { %v1125_v50 = vpop.eup %1124  ;;  %v750_v51 = vmul.f32 0.6931472, %v1123_v48 }
 0x129   : > { %v687_v53 = vmul.f32 %v1125_v50, %v685_v40  ;;  %vm692_vm8 = vweird.f32 %v1125_v50  ;;  %v1127_v21 = vpop.eup %1126 }
 0x12a   : > { %v756_v54 = vsel %vm755_vm6, %v753_v47, %v750_v51  ;;  %vm693_vm11 = vmor %vm691_vm7, %vm692_vm8  ;;  %v1129_v22 = vpop.eup %1128  ;;  %v780_v25 = vmul.f32 0.6931472, %v1127_v21  ;;  %vm811_vm6 = vcmp.eq.s32.totalorder %v1343_v13, 4 }
 0x12b   : > { %v757_v57 = vadd.f32 %v756_v54, %v743_v49  ;;  %v688_v58 = vsub.f32 1.0, %v687_v53  ;;  %v784_v26 = vmul.f32 0.6931472, %v1129_v22 }
 0x12c   : > { %v781_v28 = vmax.f32 %v780_v25, -100.0 }
 0x12d   : > { %v758_v60 = vmul.f32 %v757_v57, %v1372_v52  ;;  %v689_v61 = vmul.f32 %v1125_v50, %v688_v58  ;;  %v785_v29 = vmax.f32 %v784_v26, -100.0 }
 0x12e   : > { %v786_v32 = vmul.f32 %v781_v28, %v771_v24 }
 0x12f   : > { %v760_v0 = vsel %vm759_vm9, %v758_v60, 0.0  ;;  %v690_v2 = vadd.f32 %v1125_v50, %v689_v61  ;;  %v787_v33 = vmul.f32 %v785_v29, %v772_v27 }
 0x130   : > { %761 = vadd.xlane.f32.xlu2 %v760_v0 }
 0x131   : > { %v694_v4 = vsel %vm693_vm11, %v1125_v50, %v690_v2  ;;  %v788_v34 = vadd.f32 %v787_v33, %v786_v32 }
 0x132   : > { %v699_v5 = vsel %vm696_vm12, %v698_v63, %v694_v4 }
 0x133   : > { %vm701_vm13 = vcmp.ne.f32.partialorder %v699_v5, %v699_v5  ;;  %v789_v35 = vsel %vm759_vm9, %v788_v34, 0.0 }
 0x134   : > { %v702_v6 = vsel %vm701_vm13, 0.0, %v699_v5 }
 0x135   : > { %vm703_vm14 = vcmp.eq.f32.partialorder %v702_v6, inf }
 0x136   : > { %v704_v7 = vsel %vm703_vm14, 1.0, %v702_v6 }
 0x137   : > { %v705_v8 = vmax.f32 %v704_v7, -3.4028235e+38 }
 0x139   : > { %v707_v10 = vsub.f32 %v705_v8, %v706_v9 }
 0x13b   : > { %v708_v11 = vmul.f32 %v707_v10, %v707_v10 }
 0x13d   : > { %v713_v15 = vmul.f32 %v711_v14, %v708_v11 }
 0x13f   : > { %v715_v17 = vsel %vm714_vm0, %v713_v15, 0.0 }
 0x140   : > { %716 = vadd.xlane.f32.xlu0 %v715_v17 }
 0x150   : > { %672 = vadd.xlane.f32.xlu1 %v671_v3 }
 0x198   : > { %v652_v30 = vpop.permute.xlu1 %651 }
 0x199   : > { %v655_v31 = vsel %vm654_vm10, %v652_v30, 0.0 }
 0x19a   : > { %656 = vadd.xlane.f32.xlu2 %v655_v31 }
 0x1a2   : > { %790 = vadd.xlane.f32.xlu2 %v789_v35 }
 0x1a3   : > { %v762_v38 = vpop.xlane.xlu2 %761 }
 0x1a4   : > { %v763_v41 = vrot.slane %v762_v38, 4 }
 0x1a6   : > { %v764_v44 = vadd.f32 %v763_v41, %v762_v38 }
 0x1a8   : > { %v765_v49 = vrot.slane %v764_v44, 2 }
 0x1aa   : > { %v766_v54 = vadd.f32 %v765_v49, %v764_v44 }
 0x1ac   : > { %v767_v61 = vrot.slane %v766_v54, 1 }
 0x1ae   : > { %v768_v3 = vadd.f32 %v767_v61, %v766_v54 }
 0x1b3   : > { %v717_v36 = vpop.xlane.xlu0 %716 }
 0x1b4   : > { %v718_v39 = vrot.slane %v717_v36, 4 }
 0x1b6   : > { %v719_v42 = vadd.f32 %v718_v39, %v717_v36 }
 0x1b8   : > { %v720_v45 = vrot.slane %v719_v42, 2 }
 0x1ba   : > { %v721_v51 = vadd.f32 %v720_v45, %v719_v42 }
 0x1bc   : > { %v722_v56 = vrot.slane %v721_v51, 1 }
 0x1be   : > { %v723_v0 = vadd.f32 %v722_v56, %v721_v51 }
 0x1c3   : > { %v673_v37 = vpop.xlane.xlu1 %672 }
 0x1c4   : > { %v674_v40 = vrot.slane %v673_v37, 4 }
 0x1c6   : > { %v675_v43 = vadd.f32 %v674_v40, %v673_v37 }
 0x1c8   : > { %v676_v46 = vrot.slane %v675_v43, 2 }
 0x1ca   : > { %v677_v52 = vadd.f32 %v676_v46, %v675_v43 }
 0x1cc   : > { %v678_v58 = vrot.slane %v677_v52, 1 }
 0x1ce   : > { %v679_v1 = vadd.f32 %v678_v58, %v677_v52 }
 0x20d   : > { %v657_v47 = vpop.xlane.xlu2 %656 }
 0x20e   : > { %v658_v48 = vrot.slane %v657_v47, 4 }
 0x210   : > { %v659_v50 = vadd.f32 %v658_v48, %v657_v47 }
 0x212   : > { %v660_v53 = vrot.slane %v659_v50, 2 }
 0x214   : > { %v661_v55 = vadd.f32 %v660_v53, %v659_v50 }
 0x215   : > { %v791_v57 = vpop.xlane.xlu2 %790 }
 0x216   : > { %v792_v59 = vrot.slane %v791_v57, 4  ;;  %v662_v60 = vrot.slane %v661_v55, 1 }
 0x218   : > { %v793_v62 = vadd.f32 %v792_v59, %v791_v57  ;;  %v663_v63 = vadd.f32 %v662_v60, %v661_v55 }
 0x21a   : > { %v794_v2 = vrot.slane %v793_v62, 2  ;;  %1042 = vpush %v663_v63 }
 0x21b   : > { %1044 = vpush %v679_v1 }
 0x21c   : > { %v795_v4 = vadd.f32 %v794_v2, %v793_v62  ;;  %1046 = vpush %v723_v0 }
 0x21d   : > { %1048 = vpush %v768_v3 }
 0x21e   : > { %v796_v5 = vrot.slane %v795_v4, 1 }
 0x220   : > { %v797_v6 = vadd.f32 %v796_v5, %v795_v4 }
 0x222   : > { %1050 = vpush %v797_v6 }
 0x24b   : > { %s1043_s28 = spop %1042 }
 0x24c   : > { %v800_v7 = vstv %s1043_s28  ;;  %s1045_s29 = spop %1044  ;;  %s829_s28 = sshll.u32 %s825_s20, 4  ;;  %s830_s28 = int_to_ptr.hbm [resolvable:$true] %s829_s28 }
 0x24d   : > { %v801_v8 = vsel %vm799_vm2, %v800_v7, 0.0  ;;  %v803_v9 = vstv %s1045_s29  ;;  %s1047_s11 = spop %1046 }
 0x24e   : > { %v804_v10 = vsel %vm802_vm3, %v803_v9, %v801_v8  ;;  %v806_v11 = vstv %s1047_s11  ;;  %s1049_s22 = spop %1048  ;;  %s1144_s11 = sshra.s32 %s830_s28, 4  ;;  %s1145_s11 = int_to_ptr.hbm [resolvable:$true] %s1144_s11 }
 0x24f   : > { %v807_v12 = vsel %vm805_vm4, %v806_v11, %v804_v10  ;;  %v809_v14 = vstv %s1049_s22  ;;  %s1146_s12 = scalar_lea.hbm %s1145_s11, 1  ;;  %p1151_p1 = scmp.lt.s32.totalorder %s1145_s11, %s1446_s10 }
 0x250   : > { %v810_v15 = vsel %vm808_vm5, %v809_v14, %v807_v12  ;;  %p1147_p12 = scmp.ne.s32.totalorder %s1145_s11, %s1146_s12  ;;  %p1152_p2 = scmp.lt.s32.totalorder %s1150_s0, %s1146_s12 }
 0x252   : > { %p1148_p13 = pnand %p1147_p12, %p1308_p4  ;;  %p1153_p3 = por %p1152_p2, %p1151_p1 }
 0x253   : > { %s1051_s29 = spop %1050 }
 0x254   : > { %v812_v16 = vstv %s1051_s29  ;;  %p1149_p0 = pneg %p1148_p13 }
 0x255   : > { %v813_v17 = vsel %vm811_vm6, %v812_v16, %v810_v15 }
 0x256   : > { %814 = vst [vmem:[%s550_s24] sm:$0x1] %v813_v17  ;;  %p1154_p5 = pnand %p1153_p3, %p1149_p0 }
 0x258   : > { %1157 = shalt.err (!%p1154_p5)
}
 0x259   : > { %1052 = dma.vmem_to_hbm [thread:$0]  (%p1308_p4), %s828_s30, 16, %s830_s28, %s816_s16  }
 0x25a PF: > { %p1058_p6 = scmp.ge.s32.totalorder %s1208_s18, 2  ;;  %s841_s27 = sand.u32 1, %s1188_s13  }
 0x25b   : > { %s842_s24 = scalar_lea.sflag [#allocation3], %s841_s27 }
 0x25c   : > { %p1055_p7 = pnand %p1058_p6, %p1315_p8 }
 0x25e   : > { %p1056_p9 = pneg %p1055_p7 }
 0x260   : > { %1183 = dma.done.wait (%p1056_p9), %s842_s24, 16  }
 0x261   : > { %1185 = vsyncadd (%p1056_p9), %s842_s24, 4294967280  ;;  %s23_s18 = sadd.s32 1, %s1208_s18   ;;  %s1453_s13 = smov %s1192_s14 }
 0x262   : > { %p20_p10 = scmp.ge.s32.totalorder %s23_s18, 4   ;;  %s1454_s14 = smov %s1196_s15 }
 0x263   : > { %s1455_s15 = smov %s1321_s26  ;;  %s1456_s16 = smov %s1204_s17 }
 0x264   : > { %s1457_s17 = smov %s1459_s21  ;;  %22 = sbr.rel (!%p20_p10) target bundleno = 7 (0x7), region = 122 }
 0x269   :  { %847 = vsyncpa [#allocation3], 1 }
 0x26a   :  { %849 = vsyncpa [#allocation3 + $0x1], 1 }

</bundles_post_ra>
